<compile_context>
chip_gen: v6e
topology: v6e:2x2x1
jax: 0.10.0
libtpu: 0.0.40
codegen_flags: <defaults>
</compile_context>

<pallas_src>
import functools

import jax
import jax.numpy as jnp
from jax.experimental import pallas as pl
from jax.experimental.pallas import tpu as pltpu


def _rup(n, m):
    return ((n + m - 1) // m) * m


def _fused_mlp_kernel(x_ref, *refs, activations, logical_outs, sub_rows):
    """Whole MLP for one batch tile: h_{l+1} = act_l(h_l @ W_l^T + b_l).

    The tile is processed in `sub_rows`-row chunks so the f32 activation live
    range stays bounded even for large batch tiles (perf review item #2).
    """
    o_ref = refs[-1]
    params = refs[:-1]                      # (w0, b0, w1, b1, ...)
    tb = x_ref.shape[0]
    n_sub = tb // sub_rows

    mask_cache = {}                         # (f_pad, f_out) -> lane-valid mask

    def layer_chain(h):
        # h: [sub_rows, F_pad]; bf16 on entry, f32 between layers.
        for li, act in enumerate(activations):
            w = params[2 * li][...]         # [Fin_pad, Fout_pad] bf16 (= W^T)
            b = params[2 * li + 1][...]     # [1, Fout_pad]       f32
            f_out = logical_outs[li]
            f_pad = w.shape[1]

            # MXU: bf16 operands, f32 accumulation (first-layer astype is a no-op).
            y = jnp.dot(h.astype(jnp.bfloat16), w,
                        preferred_element_type=jnp.float32)
            y = y + b                       # broadcast bias, f32 VPU

            if act == 'ReLu':
                y = jnp.maximum(y, 0.0)
            elif act == 'Sigmoid':
                y = jax.nn.sigmoid(y)
            elif act in ('Softmax', 'Log_Softmax'):
                valid = None
                if f_pad > f_out:
                    key = (f_pad, f_out)
                    if key not in mask_cache:   # hoisted: built once per shape
                        lane = jax.lax.broadcasted_iota(
                            jnp.int32, (sub_rows, f_pad), 1)
                        mask_cache[key] = lane < f_out
                    valid = mask_cache[key]
                    # Mask padded lanes so they don't perturb the row norm.
                    y = jnp.where(valid, y, -jnp.inf)
                m = jnp.max(y, axis=-1, keepdims=True)
                if act == 'Softmax':
                    e = jnp.exp(y - m)
                    # Exact normalization (strict parity with torch.softmax).
                    y = e / jnp.sum(e, axis=-1, keepdims=True)
                else:  # Log_Softmax (torch dim=1)
                    s = y - m
                    y = s - jnp.log(jnp.sum(jnp.exp(s), axis=-1, keepdims=True))
                if valid is not None:
                    # Keep padded lanes finite (0) so later matmuls/stores are safe.
                    y = jnp.where(valid, y, 0.0)
            # else: identity (None / unrecognized)
            h = y
        return h

    if n_sub == 1:
        o_ref[...] = layer_chain(x_ref[...]).astype(o_ref.dtype)
    else:
        @pl.loop(0, n_sub)
        def _(c):
            r0 = pl.multiple_of(c * sub_rows, sub_rows)
            h = x_ref[pl.ds(r0, sub_rows), :]
            o_ref[pl.ds(r0, sub_rows), :] = layer_chain(h).astype(o_ref.dtype)


def mlp_forward(x, layers):
    """Fused forward over all layers. layers: (w_pad, b_pad, act, fin, fout)."""
    if not layers:
        return x
    B, F_in = x.shape
    f0_pad = layers[0][0].shape[0]
    fL_pad = layers[-1][0].shape[1]
    fL = layers[-1][4]

    # Batch tiling (perf review #1/#2): large tiles amortize per-grid-step
    # overhead; SUB-row in-kernel chunks bound vreg live ranges.
    if B >= 256:
        SUB = 256
        TB = min(1024, _rup(B, SUB))
    else:
        SUB = _rup(max(B, 1), 8)
        TB = SUB
    grid = (pl.cdiv(B, TB),)

    # Input in bf16, padded only on the feature axis (perf review #3/#5).
    # The batch remainder is handled by the non-divisible final grid block
    # (garbage rows are never written back).
    x_in = x.astype(jnp.bfloat16)
    if f0_pad != F_in:
        x_in = jnp.pad(x_in, ((0, 0), (0, f0_pad - F_in)))

    activations = tuple(l[2] for l in layers)
    logical_outs = tuple(l[4] for l in layers)
    kernel = functools.partial(_fused_mlp_kernel,
                               activations=activations,
                               logical_outs=logical_outs,
                               sub_rows=SUB)

    in_specs = [pl.BlockSpec((TB, f0_pad), lambda i: (i, 0))]
    args = [x_in]
    for w, b, _, _, _ in layers:
        # Constant block index over the grid -> weights stay VMEM-resident.
        in_specs.append(pl.BlockSpec(w.shape, lambda i: (0, 0)))
        in_specs.append(pl.BlockSpec(b.shape, lambda i: (0, 0)))
        args.append(w)
        args.append(b)

    out = pl.pallas_call(
        kernel,
        out_shape=jax.ShapeDtypeStruct((B, fL_pad), jnp.float32),
        grid=grid,
        in_specs=in_specs,
        out_specs=pl.BlockSpec((TB, fL_pad), lambda i: (i, 0)),
        compiler_params=pltpu.CompilerParams(
            dimension_semantics=("parallel",)),
    )(*args)

    # Only a feature slice is needed (batch axis is already exact).
    return out[:, :fL] if fL_pad != fL else out


def _jnp_reference(x, layers):
    """Pure-XLA forward (same bf16 weights, f32 math). Reference / tiny-batch path."""
    h = x.astype(jnp.float32)
    for w, b, act, fin, fout in layers:
        wf = w[:fin, :fout].astype(jnp.float32)
        bf = b[0, :fout]
        y = h @ wf + bf
        if act == 'ReLu':
            y = jnp.maximum(y, 0.0)
        elif act == 'Sigmoid':
            y = jax.nn.sigmoid(y)
        elif act == 'Softmax':
            y = jax.nn.softmax(y, axis=-1)
        elif act == 'Log_Softmax':
            y = jax.nn.log_softmax(y, axis=-1)
        h = y
    return h


class BuildNetworkPallas:
    """JAX/Pallas equivalent of BuildNetwork (Linear layers only)."""

    def __init__(self, inp, key, small_batch_fast_path=0):
        # inp[i] = [number_of_nodes, layer_type, activation, bias]
        self.input = inp
        # Perf review #10: below this batch size, dispatch/pad overhead beats
        # any kernel win -> plain XLA path.  Default 0 = always use Pallas.
        self.small_batch_fast_path = small_batch_fast_path
        # each entry: (w_pad bf16 [Fin_pad, Fout_pad] (= padded W^T),
        #              b_pad f32 [1, Fout_pad], activation, fin, fout)
        self.layers = []
        for i in range(len(inp) - 1):
            in_nodes = inp[i][0]
            out_nodes = inp[i + 1][0]
            layer_type = inp[i + 1][1]
            activation = inp[i + 1][2]
            use_bias = inp[i + 1][3]
            if layer_type == 'Abc':
                # TODO(synk): 'Abc' layer type is a no-op stub in the reference code.
                continue
            key, kw, kb = jax.random.split(key, 3)
            # torch.nn.Linear default init: uniform +/- 1/sqrt(fan_in).
            bound = 1.0 / float(in_nodes) ** 0.5
            w = jax.random.uniform(kw, (out_nodes, in_nodes), jnp.float32,
                                   minval=-bound, maxval=bound)
            if use_bias:
                b = jax.random.uniform(kb, (out_nodes,), jnp.float32,
                                       minval=-bound, maxval=bound)
            else:
                b = jnp.zeros((out_nodes,), jnp.float32)

            # Pad to 128 (lane tile) only; never toward 256 (perf review #8).
            fin_p = _rup(in_nodes, 128)
            fout_p = _rup(out_nodes, 128)
            w_pad = jnp.zeros((fin_p, fout_p), jnp.float32)
            w_pad = w_pad.at[:in_nodes, :out_nodes].set(w.T)
            b_pad = jnp.zeros((1, fout_p), jnp.float32)
            b_pad = b_pad.at[0, :out_nodes].set(b)

            self.layers.append((w_pad.astype(jnp.bfloat16), b_pad,
                                activation, in_nodes, out_nodes))

        print('Network structure: ',
              [(fin, fout, act) for _, _, act, fin, fout in self.layers])

        # Single fused pallas_call per forward; weights are jit constants.
        layers = self.layers
        self._forward = jax.jit(lambda x: mlp_forward(x, layers))
        self._ref_forward = jax.jit(lambda x: _jnp_reference(x, layers))

    def reference_forward(self, x):
        if not self.layers:
            return x
        return self._ref_forward(x)

    def __call__(self, x):
        if not self.layers:
            return x
        if x.shape[0] < self.small_batch_fast_path:
            return self._ref_forward(x)
        return self._forward(x)


if __name__ == "__main__":
    key = jax.random.PRNGKey(0)

    # [number_of_nodes, layer_type, activation, bias]
    spec = [
        [32, 'Linear', None,          True],   # input features
        [64, 'Linear', 'ReLu',        True],
        [32, 'Linear', 'Sigmoid',     True],
        [16, 'Linear', 'Log_Softmax', True],
    ]

    key, knet, kx = jax.random.split(key, 3)
    net = BuildNetworkPallas(spec, knet)

    batch = 8
    x = jax.random.normal(kx, (batch, spec[0][0]), jnp.float32)

    out = jax.block_until_ready(net(x))                 # Pallas path
    ref = jax.block_until_ready(net.reference_forward(x))

    # sanity: shape, finiteness, log_softmax rows exponentiate to prob sums of 1
    assert out.shape == (batch, spec[-1][0])
    assert bool(jnp.all(jnp.isfinite(out)))
    row_sums = jnp.sum(jnp.exp(out), axis=-1)
    assert bool(jnp.all(jnp.abs(row_sums - 1.0) < 1e-3))
    # parity with pure-XLA reference (same bf16 weights; bf16 activations in-kernel)
    assert bool(jnp.max(jnp.abs(out - ref)) < 5e-2)

    print("KERNEL_OK")
</pallas_src>

<mosaic_0001>
module attributes {stable_mosaic.version = 11 : i64} {
  func.func @_fused_mlp_kernel(%arg0: i32, %arg1: memref<8x128xbf16, #tpu.memory_space<vmem>>, %arg2: memref<128x128xbf16, #tpu.memory_space<vmem>>, %arg3: memref<1x128xf32, #tpu.memory_space<vmem>>, %arg4: memref<128x128xbf16, #tpu.memory_space<vmem>>, %arg5: memref<1x128xf32, #tpu.memory_space<vmem>>, %arg6: memref<128x128xbf16, #tpu.memory_space<vmem>>, %arg7: memref<1x128xf32, #tpu.memory_space<vmem>>, %arg8: memref<8x128xf32, #tpu.memory_space<vmem>>) attributes {dimension_semantics = [#tpu.dimension_semantics<parallel>], iteration_bounds = array<i64: 1>, scalar_prefetch = 0 : i64, scratch_operands = 0 : i64, tpu.core_type = #tpu.core_type<tc>, window_params = [{transform_indices = @transform_0, window_bounds = array<i64: 8, 128>}, {pipeline_mode = #tpu.pipeline_mode<synchronous>, transform_indices = @transform_1, window_bounds = array<i64: 128, 128>}, {pipeline_mode = #tpu.pipeline_mode<synchronous>, transform_indices = @transform_2, window_bounds = array<i64: 1, 128>}, {pipeline_mode = #tpu.pipeline_mode<synchronous>, transform_indices = @transform_3, window_bounds = array<i64: 128, 128>}, {pipeline_mode = #tpu.pipeline_mode<synchronous>, transform_indices = @transform_4, window_bounds = array<i64: 1, 128>}, {pipeline_mode = #tpu.pipeline_mode<synchronous>, transform_indices = @transform_5, window_bounds = array<i64: 128, 128>}, {pipeline_mode = #tpu.pipeline_mode<synchronous>, transform_indices = @transform_6, window_bounds = array<i64: 1, 128>}, {transform_indices = @transform_7, window_bounds = array<i64: 8, 128>}]} {
    %c0 = arith.constant 0 : index
    %c0_0 = arith.constant 0 : index
    %0 = vector.load %arg1[%c0, %c0_0] : memref<8x128xbf16, #tpu.memory_space<vmem>>, vector<8x128xbf16>
    %c0_1 = arith.constant 0 : index
    %c0_2 = arith.constant 0 : index
    %1 = vector.load %arg2[%c0_1, %c0_2] : memref<128x128xbf16, #tpu.memory_space<vmem>>, vector<128x128xbf16>
    %c0_3 = arith.constant 0 : index
    %c0_4 = arith.constant 0 : index
    %2 = vector.load %arg3[%c0_3, %c0_4] : memref<1x128xf32, #tpu.memory_space<vmem>>, vector<1x128xf32>
    %cst = arith.constant dense<0.000000e+00> : vector<8x128xf32>
    %3 = tpu.matmul %0, %1, %cst {dimension_numbers = #tpu.dot_dimension_numbers<[1], [0], [0], [1], [0, 0, 1, 1], [], []>} : vector<8x128xbf16>, vector<128x128xbf16>, vector<8x128xf32> -> vector<8x128xf32>
    %4 = vector.broadcast %2 : vector<1x128xf32> to vector<8x128xf32>
    %5 = arith.addf %3, %4 : vector<8x128xf32>
    %cst_5 = arith.constant 0.000000e+00 : f32
    %6 = vector.broadcast %cst_5 : f32 to vector<8x128xf32>
    %7 = arith.maximumf %5, %6 : vector<8x128xf32>
    %c0_6 = arith.constant 0 : index
    %c0_7 = arith.constant 0 : index
    %8 = vector.load %arg4[%c0_6, %c0_7] : memref<128x128xbf16, #tpu.memory_space<vmem>>, vector<128x128xbf16>
    %c0_8 = arith.constant 0 : index
    %c0_9 = arith.constant 0 : index
    %9 = vector.load %arg5[%c0_8, %c0_9] : memref<1x128xf32, #tpu.memory_space<vmem>>, vector<1x128xf32>
    %10 = arith.truncf %7 : vector<8x128xf32> to vector<8x128xbf16>
    %cst_10 = arith.constant dense<0.000000e+00> : vector<8x128xf32>
    %11 = tpu.matmul %10, %8, %cst_10 {dimension_numbers = #tpu.dot_dimension_numbers<[1], [0], [0], [1], [0, 0, 1, 1], [], []>} : vector<8x128xbf16>, vector<128x128xbf16>, vector<8x128xf32> -> vector<8x128xf32>
    %12 = vector.broadcast %9 : vector<1x128xf32> to vector<8x128xf32>
    %13 = arith.addf %11, %12 : vector<8x128xf32>
    %14 = arith.negf %13 : vector<8x128xf32>
    %15 = math.exp %14 : vector<8x128xf32>
    %cst_11 = arith.constant 1.000000e+00 : f32
    %16 = vector.broadcast %cst_11 : f32 to vector<8x128xf32>
    %17 = arith.addf %16, %15 : vector<8x128xf32>
    %18 = arith.divf %16, %17 : vector<8x128xf32>
    %c0_12 = arith.constant 0 : index
    %c0_13 = arith.constant 0 : index
    %19 = vector.load %arg6[%c0_12, %c0_13] : memref<128x128xbf16, #tpu.memory_space<vmem>>, vector<128x128xbf16>
    %c0_14 = arith.constant 0 : index
    %c0_15 = arith.constant 0 : index
    %20 = vector.load %arg7[%c0_14, %c0_15] : memref<1x128xf32, #tpu.memory_space<vmem>>, vector<1x128xf32>
    %21 = arith.truncf %18 : vector<8x128xf32> to vector<8x128xbf16>
    %cst_16 = arith.constant dense<0.000000e+00> : vector<8x128xf32>
    %22 = tpu.matmul %21, %19, %cst_16 {dimension_numbers = #tpu.dot_dimension_numbers<[1], [0], [0], [1], [0, 0, 1, 1], [], []>} : vector<8x128xbf16>, vector<128x128xbf16>, vector<8x128xf32> -> vector<8x128xf32>
    %23 = vector.broadcast %20 : vector<1x128xf32> to vector<8x128xf32>
    %24 = arith.addf %22, %23 : vector<8x128xf32>
    %25 = tpu.iota {dimensions = array<i32: 1>} : vector<8x128xi32>
    %c16_i32 = arith.constant 16 : i32
    %26 = vector.broadcast %c16_i32 : i32 to vector<8x128xi32>
    %27 = arith.cmpi slt, %25, %26 : vector<8x128xi32>
    %cst_17 = arith.constant 0xFF800000 : f32
    %28 = vector.broadcast %cst_17 : f32 to vector<8x128xf32>
    %29 = arith.select %27, %24, %28 : vector<8x128xi1>, vector<8x128xf32>
    %cst_18 = arith.constant dense<0xFF800000> : vector<8xf32>
    %30 = vector.multi_reduction <maximumf>, %29, %cst_18 [1] : vector<8x128xf32> to vector<8xf32>
    %31 = vector.shape_cast %30 : vector<8xf32> to vector<8x1xf32>
    %32 = vector.broadcast %31 : vector<8x1xf32> to vector<8x128xf32>
    %33 = arith.subf %29, %32 : vector<8x128xf32>
    %34 = math.exp %33 : vector<8x128xf32>
    %cst_19 = arith.constant dense<0.000000e+00> : vector<8xf32>
    %35 = vector.multi_reduction <add>, %34, %cst_19 [1] : vector<8x128xf32> to vector<8xf32>
    %36 = vector.shape_cast %35 : vector<8xf32> to vector<8x1xf32>
    %37 = math.log %36 : vector<8x1xf32>
    %38 = vector.broadcast %37 : vector<8x1xf32> to vector<8x128xf32>
    %39 = arith.subf %33, %38 : vector<8x128xf32>
    %cst_20 = arith.constant 0.000000e+00 : f32
    %40 = vector.broadcast %cst_20 : f32 to vector<8x128xf32>
    %41 = arith.select %27, %39, %40 : vector<8x128xi1>, vector<8x128xf32>
    %c0_21 = arith.constant 0 : index
    %c0_22 = arith.constant 0 : index
    %42 = vector.load %arg8[%c0_21, %c0_22] : memref<8x128xf32, #tpu.memory_space<vmem>>, vector<8x128xf32>
    tpu.vector_store %arg8[%c0_21, %c0_22], %41 {strides = array<i32>} : memref<8x128xf32, #tpu.memory_space<vmem>>, vector<8x128xf32>,
    return
  }
  func.func @transform_0(%arg0: i32) -> (i32, i32) {
    %c0_i32 = arith.constant 0 : i32
    %c0_i32_0 = arith.constant 0 : i32
    return %arg0, %c0_i32 : i32, i32
  }
  func.func @transform_1(%arg0: i32) -> (i32, i32) {
    %c0_i32 = arith.constant 0 : i32
    %c0_i32_0 = arith.constant 0 : i32
    %c0_i32_1 = arith.constant 0 : i32
    return %c0_i32, %c0_i32_0 : i32, i32
  }
  func.func @transform_2(%arg0: i32) -> (i32, i32) {
    %c0_i32 = arith.constant 0 : i32
    %c0_i32_0 = arith.constant 0 : i32
    %c0_i32_1 = arith.constant 0 : i32
    return %c0_i32, %c0_i32_0 : i32, i32
  }
  func.func @transform_3(%arg0: i32) -> (i32, i32) {
    %c0_i32 = arith.constant 0 : i32
    %c0_i32_0 = arith.constant 0 : i32
    %c0_i32_1 = arith.constant 0 : i32
    return %c0_i32, %c0_i32_0 : i32, i32
  }
  func.func @transform_4(%arg0: i32) -> (i32, i32) {
    %c0_i32 = arith.constant 0 : i32
    %c0_i32_0 = arith.constant 0 : i32
    %c0_i32_1 = arith.constant 0 : i32
    return %c0_i32, %c0_i32_0 : i32, i32
  }
  func.func @transform_5(%arg0: i32) -> (i32, i32) {
    %c0_i32 = arith.constant 0 : i32
    %c0_i32_0 = arith.constant 0 : i32
    %c0_i32_1 = arith.constant 0 : i32
    return %c0_i32, %c0_i32_0 : i32, i32
  }
  func.func @transform_6(%arg0: i32) -> (i32, i32) {
    %c0_i32 = arith.constant 0 : i32
    %c0_i32_0 = arith.constant 0 : i32
    %c0_i32_1 = arith.constant 0 : i32
    return %c0_i32, %c0_i32_0 : i32, i32
  }
  func.func @transform_7(%arg0: i32) -> (i32, i32) {
    %c0_i32 = arith.constant 0 : i32
    %c0_i32_0 = arith.constant 0 : i32
    return %arg0, %c0_i32 : i32, i32
  }
}

</mosaic_0001>

<bundles_post_ra>
// kernel: _lambda_.1
= control target key start
LH: loop header
LB: loop body
LE: loop exit
PB: predicated region body
PF: predicated region fallthrough
CT: control target
= control target key end

     0   :  { %12 = vsyncpa [#allocation3], 0  ;;  %s789_s0 = inlined_call_operand.vmem [shape: bf16[8,128], index: 0, kind: input, shape index: {}]   ;;  %s790_s1 = inlined_call_operand.hbm [shape: bf16[128,128], index: 1, kind: input, shape index: {}]   ;;  %s791_s2 = inlined_call_operand.vmem [shape: f32[1,128], index: 2, kind: input, shape index: {}]   ;;  %s792_s3 = inlined_call_operand.hbm [shape: bf16[128,128], index: 3, kind: input, shape index: {}]   ;;  %s793_s4 = inlined_call_operand.vmem [shape: f32[1,128], index: 4, kind: input, shape index: {}]   ;;  %s794_s5 = inlined_call_operand.hbm [shape: bf16[128,128], index: 5, kind: input, shape index: {}]   ;;  %s795_s6 = inlined_call_operand.vmem [shape: f32[1,128], index: 6, kind: input, shape index: {}]   ;;  %s796_s7 = inlined_call_operand.hbm [shape: f32[8,128], index: 7, kind: output, shape index: {}]  }
   0x1   :  { %13 = vsyncpa [#allocation6], 0 }
   0x2   :  { %14 = vsyncpa [#allocation4], 0  ;;  %s685_s24 = smov [#allocation5]   ;;  %s686_s26 = smov [#allocation2]  }
   0x3   :  { %s36_s25 = sshll.u32 %s685_s24, 4  ;;  %s22_s27 = sshll.u32 %s686_s26, 4  ;;  %s37_s25 = int_to_ptr.vmem [resolvable:$true] %s36_s25  ;;  %s23_s27 = int_to_ptr.vmem [resolvable:$true] %s22_s27 }
   0x4   :  { %s607_s28 = scalar_lea.vmem %s37_s25, 1024  ;;  %p612_p1 = scmp.lt.s32.totalorder %s37_s25, %s37_s25 }
   0x5   :  { %p608_p0 = scmp.ne.s32.totalorder %s37_s25, %s607_s28  ;;  %p613_p2 = scmp.lt.s32.totalorder %s607_s28, %s607_s28 }
   0x7   :  { %p614_p3 = por %p613_p2, %p612_p1 }
   0x9   :  { %p615_p4 = pnand %p614_p3, %p608_p0 }
   0xb   :  { %618 = shalt.err (!%p615_p4)
}
   0xc   :  { %s687_s29 = smov 64   ;;  %s688_s30 = smov 4  }
   0xd   :  { %42 = dma.hbm_to_vmem [thread:$0]  %s792_s3, 1024, %s37_s25, [#allocation6], %s687_s29, %s687_s29, %s688_s30  }
   0xe   :  { %s627_s10 = scalar_lea.vmem %s23_s27, 1024  ;;  %p632_p6 = scmp.lt.s32.totalorder %s23_s27, %s23_s27 }
   0xf   :  { %p628_p5 = scmp.ne.s32.totalorder %s23_s27, %s627_s10  ;;  %p633_p7 = scmp.lt.s32.totalorder %s627_s10, %s627_s10 }
  0x11   :  { %p634_p8 = por %p633_p7, %p632_p6 }
  0x13   :  { %p635_p9 = pnand %p634_p8, %p628_p5 }
  0x15   :  { %638 = shalt.err (!%p635_p9)
}
  0x16   :  { %28 = dma.hbm_to_vmem [thread:$0]  %s790_s1, 1024, %s23_s27, [#allocation3], %s687_s29, %s687_s29, %s688_s30  }
  0x17   :  { %s689_s13 = smov [#allocation7]  }
  0x18   :  { %s50_s14 = sshll.u32 %s689_s13, 4  ;;  %s51_s14 = int_to_ptr.vmem [resolvable:$true] %s50_s14 }
  0x19   :  { %s647_s15 = scalar_lea.vmem %s51_s14, 1024  ;;  %p652_p11 = scmp.lt.s32.totalorder %s51_s14, %s51_s14 }
  0x1a   :  { %p648_p10 = scmp.ne.s32.totalorder %s51_s14, %s647_s15  ;;  %p653_p12 = scmp.lt.s32.totalorder %s647_s15, %s647_s15 }
  0x1c   :  { %p654_p13 = por %p653_p12, %p652_p11 }
  0x1e   :  { %p655_p0 = pnand %p654_p13, %p648_p10 }
  0x20   :  { %658 = shalt.err (!%p655_p0)
}
  0x21   :  { %56 = dma.hbm_to_vmem [thread:$0]  %s794_s5, 1024, %s51_s14, [#allocation6], %s687_s29, %s687_s29, %s688_s30  }
  0x22   :  { %679 = dma.done.wait [#allocation3], 1024  }
  0x23   :  { %680 = vsyncadd [#allocation3], 4294966272 }
  0x24   :  { %681 = dma.done.wait [#allocation6], 2048  }
  0x25   :  { %682 = vsyncadd [#allocation6], 4294965248  ;;  %v690_v0 = vmov 0.0   ;;  %vm691_vm0 = vmmov 0   ;;  %v567_v1 = vld [vmem:[#allocation2 + $0x38] sm:$0xff]   ;;  %v568_v2 = vld [vmem:[#allocation2 + $0x30] sm:$0xff]   ;;  %v412_v45 = vlaneseq }
  0x26   :  { %499 = vmatprep.subr.bf16.mxu0 %v690_v0  ;;  %515 = vmatprep.mubr.msk.bf16.mxu0 %vm691_vm0, %v690_v0  ;;  %v569_v3 = vld [vmem:[#allocation2 + $0x28] sm:$0xff]   ;;  %v575_v4 = vld [vmem:[#allocation5 + $0x38] sm:$0xff]   ;;  %v570_v5 = vld [vmem:[#allocation2 + $0x20] sm:$0xff]  }
  0x27   :  { %519 = vmatprep.subr.bf16.mxu1 %v690_v0  ;;  %535 = vmatprep.mubr.msk.bf16.mxu1 %vm691_vm0, %v690_v0  ;;  %v576_v6 = vld [vmem:[#allocation5 + $0x30] sm:$0xff]   ;;  %v571_v7 = vld [vmem:[#allocation2 + $0x18] sm:$0xff]   ;;  %v577_v8 = vld [vmem:[#allocation5 + $0x28] sm:$0xff]   ;;  %v413_v46 = vand.u32 127, %v412_v45 }
  0x28   :  { %500 = vmatpush3.bf16.msra.mxu0 %v567_v1  ;;  %520 = vmatpush3.bf16.msra.mxu1 %v575_v4  ;;  %v572_v9 = vld [vmem:[#allocation2 + $0x10] sm:$0xff]   ;;  %v578_v10 = vld [vmem:[#allocation5 + $0x20] sm:$0xff]   ;;  %v573_v11 = vld [vmem:[#allocation2 + $0x8] sm:$0xff]  }
  0x29   :  { %501 = vmatprep.subr.bf16.mxu0 %v690_v0  ;;  %521 = vmatprep.subr.bf16.mxu1 %v690_v0  ;;  %v579_v12 = vld [vmem:[#allocation5 + $0x18] sm:$0xff]   ;;  %v574_v13 = vld [vmem:[#allocation2] sm:$0xff]   ;;  %v580_v14 = vld [vmem:[#allocation5 + $0x10] sm:$0xff]   ;;  %vm414_vm1 = vcmp.lt.s32.totalorder %v413_v46, 16 }
  0x2a   :  { %v69_v15 = vld [vmem:[%s789_s0] sm:$0xf]  ;;  %v581_v16 = vld [vmem:[#allocation5 + $0x8] sm:$0xff]   ;;  %v583_v26 = vld [vmem:[#allocation7 + $0x38] sm:$0xff]  }
  0x2b   :  { %v582_v17 = vld [vmem:[#allocation5] sm:$0xff]   ;;  %v584_v27 = vld [vmem:[#allocation7 + $0x30] sm:$0xff]   ;;  %v585_v28 = vld [vmem:[#allocation7 + $0x28] sm:$0xff]  }
  0x2c   :  { %502 = vmatpush3.bf16.msra.mxu0 %v568_v2  ;;  %522 = vmatpush3.bf16.msra.mxu1 %v576_v6  ;;  %v444_v18 = vld [vmem:[%s791_s2] ss:$0 sm:$0xff]  ;;  %v587_v30 = vld [vmem:[#allocation7 + $0x18] sm:$0xff]   ;;  %v588_v31 = vld [vmem:[#allocation7 + $0x10] sm:$0xff]  }
  0x2d   :  { %503 = vmatprep.subr.bf16.mxu0 %v690_v0  ;;  %523 = vmatprep.subr.bf16.mxu1 %v690_v0  ;;  %v586_v29 = vld [vmem:[#allocation7 + $0x20] sm:$0xff]   ;;  %v589_v32 = vld [vmem:[#allocation7 + $0x8] sm:$0xff]  }
  0x2e   :  { %v590_v33 = vld [vmem:[#allocation7] sm:$0xff]  }
  0x2f   :  { %v453_v34 = vld [vmem:[%s793_s4] ss:$0 sm:$0xff]  ;;  %s692_s4 = smov [#allocation8]  }
  0x30   :  { %504 = vmatpush3.bf16.msra.mxu0 %v569_v3  ;;  %524 = vmatpush3.bf16.msra.mxu1 %v577_v8  ;;  %v463_v47 = vld [vmem:[%s795_s6] ss:$0 sm:$0xff]  ;;  %s434_s6 = sshll.u32 %s692_s4, 4  ;;  %s435_s6 = int_to_ptr.vmem [resolvable:$true] %s434_s6 }
  0x31   :  { %505 = vmatprep.subr.bf16.mxu0 %v690_v0  ;;  %525 = vmatprep.subr.bf16.mxu1 %v690_v0  ;;  %s659_s21 = scalar_lea.vmem %s435_s6, 128  ;;  %p664_p2 = scmp.lt.s32.totalorder %s435_s6, %s435_s6 }
  0x32   :  { %p660_p1 = scmp.ne.s32.totalorder %s435_s6, %s659_s21  ;;  %p665_p3 = scmp.lt.s32.totalorder %s659_s21, %s659_s21 }
  0x34   :  { %506 = vmatpush3.bf16.msra.mxu0 %v570_v5  ;;  %526 = vmatpush3.bf16.msra.mxu1 %v578_v10  ;;  %p666_p4 = por %p665_p3, %p664_p2 }
  0x35   :  { %507 = vmatprep.subr.bf16.mxu0 %v690_v0  ;;  %527 = vmatprep.subr.bf16.mxu1 %v690_v0 }
  0x36   :  { %p667_p5 = pnand %p666_p4, %p660_p1 }
  0x38   :  { %508 = vmatpush3.bf16.msra.mxu0 %v571_v7  ;;  %528 = vmatpush3.bf16.msra.mxu1 %v579_v12 }
  0x39   :  { %509 = vmatprep.subr.bf16.mxu0 %v690_v0  ;;  %529 = vmatprep.subr.bf16.mxu1 %v690_v0 }
  0x3c   :  { %510 = vmatpush3.bf16.msra.mxu0 %v572_v9  ;;  %530 = vmatpush3.bf16.msra.mxu1 %v580_v14 }
  0x3d   :  { %511 = vmatprep.subr.bf16.mxu0 %v690_v0  ;;  %531 = vmatprep.subr.bf16.mxu1 %v690_v0 }
  0x40   :  { %512 = vmatpush3.bf16.msra.mxu0 %v573_v11  ;;  %532 = vmatpush3.bf16.msra.mxu1 %v581_v16 }
  0x41   :  { %513 = vmatprep.subr.bf16.mxu0 %v690_v0  ;;  %533 = vmatprep.subr.bf16.mxu1 %v690_v0 }
  0x44   :  { %514 = vmatpush3.bf16.msra.mxu0 %v574_v13  ;;  %534 = vmatpush3.bf16.msra.mxu1 %v582_v17 }
  0x45   :  { %539 = vmatprep.subr.bf16.mxu0 %v690_v0 }
  0x47   :  { %516 = vmatmul.mubr.bf16.vlgmr.msra.gmra.mxu0 %v69_v15 }
  0x48   :  { %555 = vmatprep.mubr.msk.bf16.mxu0 %vm691_vm0, %v690_v0  ;;  %540 = vmatpush3.bf16.msra.mxu0 %v583_v26 }
  0x49   :  { %541 = vmatprep.subr.bf16.mxu0 %v690_v0 }
  0x4c   :  { %542 = vmatpush3.bf16.msra.mxu0 %v584_v27 }
  0x4d   :  { %543 = vmatprep.subr.bf16.mxu0 %v690_v0 }
  0x50   :  { %544 = vmatpush3.bf16.msra.mxu0 %v585_v28 }
  0x51   :  { %545 = vmatprep.subr.bf16.mxu0 %v690_v0 }
  0x54   :  { %546 = vmatpush3.bf16.msra.mxu0 %v586_v29 }
  0x55   :  { %547 = vmatprep.subr.bf16.mxu0 %v690_v0 }
  0x58   :  { %548 = vmatpush3.bf16.msra.mxu0 %v587_v30 }
  0x59   :  { %549 = vmatprep.subr.bf16.mxu0 %v690_v0 }
  0x5c   :  { %550 = vmatpush3.bf16.msra.mxu0 %v588_v31 }
  0x5d   :  { %551 = vmatprep.subr.bf16.mxu0 %v690_v0 }
  0x60   :  { %552 = vmatpush3.bf16.msra.mxu0 %v589_v32 }
  0x61   :  { %553 = vmatprep.subr.bf16.mxu0 %v690_v0 }
  0x64   :  { %554 = vmatpush3.bf16.msra.mxu0 %v590_v33 }
 0x107   :  { %v175_v19 = vpop.f32.mrf.mxu0 }
 0x108   :  { %v176_v20 = vadd.f32 %v444_v18, %v175_v19 }
 0x109   :  { %v517_v21 = vpop.f32.mrf.mxu0 }
 0x10a   :  { %v181_v22 = vmax.f32 %v176_v20, 0.0 }
 0x10b   :  { %v178_v23 = vpop.f32.mrf.mxu0 }
 0x10c   :  { %v199_v24 = vpack.c.bf16 %v181_v22, %v181_v22 }
 0x10d   :  { %v518_v25 = vpop.f32.mrf.mxu0 }
 0x10e   :  { %536 = vmatmul.mubr.bf16.vlgmr.msra.gmra.mxu1 %v199_v24 }
 0x1ce   :  { %v288_v35 = vpop.f32.mrf.mxu1 }
 0x1cf   :  { %v289_v36 = vadd.f32 %v453_v34, %v288_v35 }
 0x1d0   :  { %v537_v37 = vpop.f32.mrf.mxu1 }
 0x1d1   :  { %v462_v38 = vmul.f32 -1.442695, %v289_v36 }
 0x1d2   :  { %v291_v39 = vpop.f32.mrf.mxu1 }
 0x1d3   :  { %591 = vpow2.f32 %v462_v38 }
 0x1d4   :  { %v538_v40 = vpop.f32.mrf.mxu1 }
 0x1e0   :  { %v592_v41 = vpop.eup %591 }
 0x1e1   :  { %v297_v42 = vadd.f32 1.0, %v592_v41 }
 0x1e3   :  { %593 = vrcp.f32 %v297_v42 }
 0x1f0   :  { %v594_v43 = vpop.eup %593 }
 0x1f1   :  { %v317_v44 = vpack.c.bf16 %v594_v43, %v594_v43 }
 0x1f3   :  { %556 = vmatmul.mubr.bf16.vlgmr.msra.gmra.mxu0 %v317_v44 }
 0x2b3   :  { %v406_v48 = vpop.f32.mrf.mxu0 }
 0x2b4   :  { %v407_v49 = vadd.f32 %v463_v47, %v406_v48 }
 0x2b5   :  { %v557_v50 = vpop.f32.mrf.mxu0 }
 0x2b6   :  { %v415_v51 = vsel %vm414_vm1, %v407_v49, -inf }
 0x2b7   :  { %416 = vmax.xlane.f32.xlu0 %v415_v51  ;;  %v409_v52 = vpop.f32.mrf.mxu0 }
 0x2b9   :  { %v558_v53 = vpop.f32.mrf.mxu0 }
 0x340   :  { %v417_v54 = vpop.xlane.xlu0 %416 }
 0x341   :  { %v418_v55 = vsub.f32 %v415_v51, %v417_v54 }
 0x343   :  { %v419_v56 = vmul.f32 1.442695, %v418_v55 }
 0x345   :  { %595 = vpow2.f32 %v419_v56 }
 0x352   :  { %v596_v57 = vpop.eup %595 }
 0x353   :  { %421 = vadd.xlane.f32.xlu0 %v596_v57 }
 0x3dc   :  { %v422_v58 = vpop.xlane.xlu0 %421 }
 0x3dd   :  { %597 = vlog2.f32 %v422_v58 }
 0x3ea   :  { %v598_v59 = vpop.eup %597 }
 0x3eb   :  { %v424_v60 = vmul.f32 0.6931472, %v598_v59 }
 0x3ed   :  { %v425_v61 = vsub.f32 %v418_v55, %v424_v60 }
 0x3ef   :  { %v426_v62 = vsel %vm414_vm1, %v425_v61, 0.0 }
 0x3f0   :  { %427 = vst [vmem:[#allocation8] sm:$0xff] %v426_v62 }
 0x3f1   :  { %670 = shalt.err (!%p667_p5)
}
 0x3f2   :  { %437 = dma.vmem_to_hbm [thread:$0]  %s435_s6, 128, %s796_s7, [#allocation4]  }
 0x3f3   :  { %683 = dma.done.wait [#allocation4], 128  }
 0x3f4   :  { %684 = vsyncadd [#allocation4], 4294967168 }
 0x3f5   :  { %441 = vsyncpa [#allocation3], 1 }
 0x3f6   :  { %442 = vsyncpa [#allocation6], 1 }
 0x3f7   :  { %443 = vsyncpa [#allocation4], 1 }

</bundles_post_ra>
